<compile_context>
chip_gen: v6e
topology: v6e:2x2x1
jax: 0.10.0
libtpu: 0.0.40
codegen_flags: <defaults>
</compile_context>

<pallas_src>
import functools

import jax
import jax.numpy as jnp
from jax.experimental import pallas as pl
from jax.experimental.pallas import tpu as pltpu


def rope_kernel(start_ref, x_ref, cos_hbm, sin_hbm, o_ref, cos_buf, sin_buf, sem):
    """Processes one (1, tS, H, D) block of x; tables held as (tS, D) VMEM scratch."""
    s = pl.program_id(0)          # seq tile (outer, "parallel")
    b = pl.program_id(1)          # batch   (inner, "arbitrary")
    t_s = x_ref.shape[1]
    d = x_ref.shape[3]

    # Fetch the (tS, D) cos/sin window at dynamic row offset start_pos + s*tS.
    # The tables depend only on the seq tile, so the DMA runs once per seq tile and
    # the scratch is reused for every batch step (batch axis is "arbitrary", i.e.
    # never sharded across cores, so every core sees the b == 0 step).
    @pl.when(b == 0)
    def _():
        row0 = start_ref[0] + s * t_s
        cp_cos = pltpu.make_async_copy(cos_hbm.at[pl.ds(row0, t_s), :], cos_buf, sem.at[0])
        cp_sin = pltpu.make_async_copy(sin_hbm.at[pl.ds(row0, t_s), :], sin_buf, sem.at[1])
        cp_cos.start()
        cp_sin.start()
        cp_cos.wait()
        cp_sin.wait()

    x = x_ref[...]                                        # (1, tS, H, D)

    # Neighbour lanes via XLU rotations. Pairs (2i, 2i+1) never straddle the
    # wrap-around (D is even), and the wrapped lanes are never selected below.
    x_next = pltpu.roll(x, shift=d - 1, axis=3)           # x_next[j] = x[j + 1]
    x_prev = pltpu.roll(x, shift=1, axis=3)               # x_prev[j] = x[j - 1]
    lane = jax.lax.broadcasted_iota(jnp.int32, x.shape, dimension=3)
    even = lane % 2 == 0
    x_rot = jnp.where(even, -x_next, x_prev)              # == stack([-x_odd, x_even])

    cos = cos_buf[...].astype(jnp.float32)[None, :, None, :]   # broadcast over B, H
    sin = sin_buf[...].astype(jnp.float32)[None, :, None, :]
    out = x * cos + x_rot * sin
    o_ref[...] = out.astype(o_ref.dtype)


def build_rope_cache(dim: int, max_seqlen: int, freq: int = 500000, dtype=jnp.float32):
    """Raw (max_seqlen, dim) cos/sin tables, identical to the PyTorch module.

    Pass dtype=jnp.bfloat16 to halve table HBM bytes for bf16 activations."""
    assert dim % 2 == 0, "head_dim must be even for interleaved RoPE"
    exponent = (-2.0 / dim) * jnp.repeat(jnp.arange(dim // 2, dtype=jnp.float32), 2)
    w = jnp.power(jnp.float32(freq), exponent)                  # (D,)
    pos = jnp.arange(max_seqlen, dtype=jnp.float32)[:, None]    # (max_seqlen, 1)
    theta = pos * w[None, :]                                    # (max_seqlen, D)
    return jnp.cos(theta).astype(dtype), jnp.sin(theta).astype(dtype)


def _vmem_limit_bytes() -> int:
    """Generation-aware scoped-VMEM limit: 64 MiB on 128 MiB chips (v5e/v6e), 32 MiB on v7x."""
    cap = 64 * 1024 * 1024
    try:
        cap = int(getattr(pltpu.get_tpu_info(), "vmem_capacity_bytes", cap))
    except Exception:
        pass
    return min(64 * 1024 * 1024, max(32 * 1024 * 1024, cap // 2))


def _pick_seq_tile(S: int, H: int, D: int, x_itemsize: int, tbl_itemsize: int,
                   budget_bytes: int) -> int:
    """Largest seq tile whose working set fits the budget and which divides S."""
    # Per step: x block + out block (each double-buffered) + two (tS, D) table buffers.
    h_pad = -(-H // 8) * 8
    bytes_per_row = 4 * h_pad * D * x_itemsize + 2 * D * tbl_itemsize
    rows = max(1, budget_bytes // bytes_per_row)
    if S <= rows:
        return S                      # single full-extent seq tile (always legal)
    for t in range(rows, 0, -1):      # largest divisor of S within the budget
        if S % t == 0:
            return t
    return 1


@functools.partial(jax.jit, static_argnames=("donate_x",))
def _rope_pallas(x, start_pos, cos_tbl, sin_tbl, donate_x=False):
    B, S, H, D = x.shape
    assert D % 2 == 0, "head_dim must be even for interleaved RoPE"
    assert cos_tbl.shape == sin_tbl.shape and cos_tbl.shape[-1] == D

    vmem_limit = _vmem_limit_bytes()
    tS = _pick_seq_tile(S, H, D, x.dtype.itemsize, cos_tbl.dtype.itemsize,
                        budget_bytes=(vmem_limit * 3) // 4)
    n_seq = S // tS
    # v7x has two TensorCores; keep the sharded ("parallel") seq axis even when possible.
    if n_seq > 1 and n_seq % 2 == 1 and tS % 2 == 0:
        tS //= 2
        n_seq = S // tS
    # TODO(synk): for degenerate grids (S == tS and B == 1) add a head-split parallel
    # axis so both v7x TensorCores get work.

    start = jnp.reshape(jnp.asarray(start_pos, dtype=jnp.int32), (1,))
    grid = (n_seq, B)   # seq tiles outermost -> table scratch reused across batch

    return pl.pallas_call(
        rope_kernel,
        out_shape=jax.ShapeDtypeStruct((B, S, H, D), x.dtype),
        grid_spec=pltpu.PrefetchScalarGridSpec(
            num_scalar_prefetch=1,
            grid=grid,
            in_specs=[
                pl.BlockSpec((1, tS, H, D), lambda s, b, start_ref: (b, s, 0, 0)),  # x
                pl.BlockSpec(memory_space=pl.ANY),   # cos table stays whole in HBM
                pl.BlockSpec(memory_space=pl.ANY),   # sin table stays whole in HBM
            ],
            out_specs=pl.BlockSpec((1, tS, H, D), lambda s, b, start_ref: (b, s, 0, 0)),
            scratch_shapes=[
                pltpu.VMEM((tS, D), cos_tbl.dtype),
                pltpu.VMEM((tS, D), sin_tbl.dtype),
                pltpu.SemaphoreType.DMA((2,)),
            ],
        ),
        compiler_params=pltpu.CompilerParams(
            # Batch must stay un-sharded ("arbitrary") so the per-seq-tile table DMA
            # (guarded on b == 0) is executed by every core that uses the scratch.
            dimension_semantics=("parallel", "arbitrary"),
            vmem_limit_bytes=vmem_limit,
        ),
        # Input index 1 is x (index 0 is the scalar-prefetch start_pos operand).
        input_output_aliases={1: 0} if donate_x else {},
    )(start, x, cos_tbl, sin_tbl)


def rotary_positional_embeddings(x, start_pos, cos_tbl, sin_tbl, donate_x=False):
    """RoPE forward. start_pos may be a Python int or a traced scalar (no recompiles)."""
    if isinstance(start_pos, int):
        if start_pos < 0 or start_pos + x.shape[1] > cos_tbl.shape[0]:
            raise ValueError("start_pos + seqlen exceeds the RoPE cache length")
    return _rope_pallas(x, start_pos, cos_tbl, sin_tbl, donate_x=donate_x)


def rope_reference(x, start_pos, cos_cached, sin_cached):
    """Pure-JAX transcription of the PyTorch forward (for verification)."""
    B, S, H, D = x.shape
    x_even = x[..., 0::2]
    x_odd = x[..., 1::2]
    x2 = jnp.stack([-x_odd, x_even], axis=-1).reshape(x.shape)
    cos = cos_cached[start_pos:start_pos + S][None, :, None, :].astype(jnp.float32)
    sin = sin_cached[start_pos:start_pos + S][None, :, None, :].astype(jnp.float32)
    return (x * cos + x2 * sin).astype(x.dtype)


if __name__ == "__main__":
    # llama3-style head_dim=128 so the per-head lane axis is full-width.
    B, S, H, D = 2, 8, 8, 128
    max_seqlen = 16

    key = jax.random.PRNGKey(0)
    x = jax.random.normal(key, (B, S, H, D), dtype=jnp.float32)
    cos_tbl, sin_tbl = build_rope_cache(D, max_seqlen, freq=500000)

    # Two different offsets exercise the dynamic (non-recompiling) start_pos path.
    for start_pos in (3, 7):
        out = rotary_positional_embeddings(x, start_pos, cos_tbl, sin_tbl)
        out = jax.block_until_ready(out)
        ref = rope_reference(x, start_pos, cos_tbl, sin_tbl)
        assert out.shape == (B, S, H, D)
        assert out.dtype == x.dtype
        assert jnp.allclose(out, ref, atol=1e-5, rtol=1e-5), (
            f"mismatch vs reference at start_pos={start_pos}")

    print("KERNEL_OK")
</pallas_src>

<mosaic_0001>
module attributes {stable_mosaic.version = 11 : i64} {
  func.func @rope_kernel(%arg0: i32, %arg1: i32, %arg2: memref<1xi32, #tpu.memory_space<smem>>, %arg3: memref<1x8x8x128xf32, #tpu.memory_space<vmem>>, %arg4: memref<16x128xf32, #tpu.memory_space<any>>, %arg5: memref<16x128xf32, #tpu.memory_space<any>>, %arg6: memref<1x8x8x128xf32, #tpu.memory_space<vmem>>, %arg7: memref<8x128xf32, #tpu.memory_space<vmem>>, %arg8: memref<8x128xf32, #tpu.memory_space<vmem>>, %arg9: memref<2x!tpu.dma_semaphore, #tpu.memory_space<semaphore_mem>>) attributes {dimension_semantics = [#tpu.dimension_semantics<parallel>, #tpu.dimension_semantics<arbitrary>], iteration_bounds = array<i64: 1, 2>, scalar_prefetch = 1 : i64, scratch_operands = 3 : i64, tpu.core_type = #tpu.core_type<tc>, window_params = [{transform_indices = @transform_0, window_bounds = array<i64: 1, 8, 8, 128>}, {}, {}, {transform_indices = @transform_3, window_bounds = array<i64: 1, 8, 8, 128>}]} {
    %c0_i32 = arith.constant 0 : i32
    %0 = arith.cmpi eq, %arg1, %c0_i32 : i32
    %1 = arith.extui %0 : i1 to i32
    %c0_i32_0 = arith.constant 0 : i32
    %2 = arith.cmpi ne, %1, %c0_i32_0 : i32
    scf.if %2 {
      %c0_18 = arith.constant 0 : index
      %38 = memref.load %arg2[%c0_18] : memref<1xi32, #tpu.memory_space<smem>>
      %c8_i32 = arith.constant 8 : i32
      %39 = arith.muli %arg0, %c8_i32 : i32
      %40 = arith.addi %38, %39 : i32
      %c0_i32_19 = arith.constant 0 : i32
      %c0_i32_20 = arith.constant 0 : i32
      %41 = tpu.memref_slice %arg4[%40, %c0_i32_20] : memref<16x128xf32, #tpu.memory_space<any>> -> memref<8x128xf32, #tpu.memory_space<any>>
      %42 = tpu.memref_slice %arg9[%c0_i32_19] : memref<2x!tpu.dma_semaphore, #tpu.memory_space<semaphore_mem>> -> memref<1x!tpu.dma_semaphore, #tpu.memory_space<semaphore_mem>>
      %43 = tpu.memref_squeeze %42 : memref<1x!tpu.dma_semaphore, #tpu.memory_space<semaphore_mem>> -> memref<!tpu.dma_semaphore, #tpu.memory_space<semaphore_mem>>
      tpu.enqueue_dma source(%41 : memref<8x128xf32, #tpu.memory_space<any>>) target(%arg7 : memref<8x128xf32, #tpu.memory_space<vmem>>) target_semaphore(%43 : memref<!tpu.dma_semaphore, #tpu.memory_space<semaphore_mem>>)
      %c1_i32_21 = arith.constant 1 : i32
      %c0_i32_22 = arith.constant 0 : i32
      %44 = tpu.memref_slice %arg5[%40, %c0_i32_22] : memref<16x128xf32, #tpu.memory_space<any>> -> memref<8x128xf32, #tpu.memory_space<any>>
      %45 = tpu.memref_slice %arg9[%c1_i32_21] : memref<2x!tpu.dma_semaphore, #tpu.memory_space<semaphore_mem>> -> memref<1x!tpu.dma_semaphore, #tpu.memory_space<semaphore_mem>>
      %46 = tpu.memref_squeeze %45 : memref<1x!tpu.dma_semaphore, #tpu.memory_space<semaphore_mem>> -> memref<!tpu.dma_semaphore, #tpu.memory_space<semaphore_mem>>
      tpu.enqueue_dma source(%44 : memref<8x128xf32, #tpu.memory_space<any>>) target(%arg8 : memref<8x128xf32, #tpu.memory_space<vmem>>) target_semaphore(%46 : memref<!tpu.dma_semaphore, #tpu.memory_space<semaphore_mem>>)
      %c0_i32_23 = arith.constant 0 : i32
      %c0_i32_24 = arith.constant 0 : i32
      %47 = tpu.memref_slice %arg4[%40, %c0_i32_24] : memref<16x128xf32, #tpu.memory_space<any>> -> memref<8x128xf32, #tpu.memory_space<any>>
      %48 = tpu.memref_slice %arg9[%c0_i32_23] : memref<2x!tpu.dma_semaphore, #tpu.memory_space<semaphore_mem>> -> memref<1x!tpu.dma_semaphore, #tpu.memory_space<semaphore_mem>>
      %49 = tpu.memref_squeeze %48 : memref<1x!tpu.dma_semaphore, #tpu.memory_space<semaphore_mem>> -> memref<!tpu.dma_semaphore, #tpu.memory_space<semaphore_mem>>
      tpu.wait_dma2 semaphore(%49 : memref<!tpu.dma_semaphore, #tpu.memory_space<semaphore_mem>>) src(%47 : memref<8x128xf32, #tpu.memory_space<any>>) dst(%arg7 : memref<8x128xf32, #tpu.memory_space<vmem>>)
      %c1_i32_25 = arith.constant 1 : i32
      %c0_i32_26 = arith.constant 0 : i32
      %50 = tpu.memref_slice %arg5[%40, %c0_i32_26] : memref<16x128xf32, #tpu.memory_space<any>> -> memref<8x128xf32, #tpu.memory_space<any>>
      %51 = tpu.memref_slice %arg9[%c1_i32_25] : memref<2x!tpu.dma_semaphore, #tpu.memory_space<semaphore_mem>> -> memref<1x!tpu.dma_semaphore, #tpu.memory_space<semaphore_mem>>
      %52 = tpu.memref_squeeze %51 : memref<1x!tpu.dma_semaphore, #tpu.memory_space<semaphore_mem>> -> memref<!tpu.dma_semaphore, #tpu.memory_space<semaphore_mem>>
      tpu.wait_dma2 semaphore(%52 : memref<!tpu.dma_semaphore, #tpu.memory_space<semaphore_mem>>) src(%50 : memref<8x128xf32, #tpu.memory_space<any>>) dst(%arg8 : memref<8x128xf32, #tpu.memory_space<vmem>>)
    } else {
    }
    %c0 = arith.constant 0 : index
    %c0_1 = arith.constant 0 : index
    %c0_2 = arith.constant 0 : index
    %c0_3 = arith.constant 0 : index
    %3 = vector.load %arg3[%c0, %c0_1, %c0_2, %c0_3] : memref<1x8x8x128xf32, #tpu.memory_space<vmem>>, vector<1x8x8x128xf32>
    %c127_i32 = arith.constant 127 : i32
    %4 = tpu.dynamic_rotate %3 by %c127_i32 dim 3 : vector<1x8x8x128xf32>, i32 -> vector<1x8x8x128xf32>
    %c1_i32 = arith.constant 1 : i32
    %5 = tpu.dynamic_rotate %3 by %c1_i32 dim 3 : vector<1x8x8x128xf32>, i32 -> vector<1x8x8x128xf32>
    %6 = tpu.iota {dimensions = array<i32: 3>} : vector<1x8x8x128xi32>
    %c2_i32 = arith.constant 2 : i32
    %c0_i32_4 = arith.constant 0 : i32
    %7 = arith.cmpi eq, %c2_i32, %c0_i32_4 : i32
    %c1_i32_5 = arith.constant 1 : i32
    %8 = arith.select %7, %c1_i32_5, %c2_i32 : i32
    %9 = vector.broadcast %8 : i32 to vector<1x8x8x128xi32>
    %10 = arith.remsi %6, %9 : vector<1x8x8x128xi32>
    %c0_i32_6 = arith.constant 0 : i32
    %11 = vector.broadcast %c0_i32_6 : i32 to vector<1x8x8x128xi32>
    %12 = arith.cmpi ne, %10, %11 : vector<1x8x8x128xi32>
    %c0_i32_7 = arith.constant 0 : i32
    %13 = vector.broadcast %c0_i32_7 : i32 to vector<1x8x8x128xi32>
    %14 = arith.cmpi slt, %10, %13 : vector<1x8x8x128xi32>
    %c0_i32_8 = arith.constant 0 : i32
    %15 = arith.cmpi slt, %8, %c0_i32_8 : i32
    %16 = vector.broadcast %15 : i1 to vector<1x8x8x128xi1>
    %17 = vector.broadcast %16 : vector<1x8x8x128xi1> to vector<1x8x8x128xi1>
    %18 = arith.xori %14, %17 : vector<1x8x8x128xi1>
    %19 = arith.andi %18, %12 : vector<1x8x8x128xi1>
    %20 = vector.broadcast %8 : i32 to vector<1x8x8x128xi32>
    %21 = arith.addi %10, %20 : vector<1x8x8x128xi32>
    %22 = arith.select %19, %21, %10 : vector<1x8x8x128xi1>, vector<1x8x8x128xi32>
    %c0_i32_9 = arith.constant 0 : i32
    %23 = vector.broadcast %c0_i32_9 : i32 to vector<1x8x8x128xi32>
    %24 = arith.cmpi eq, %22, %23 : vector<1x8x8x128xi32>
    %cst = arith.constant 0.000000e+00 : f32
    %25 = vector.broadcast %cst : f32 to vector<1x8x8x128xf32>
    %26 = arith.subf %25, %4 : vector<1x8x8x128xf32>
    %27 = arith.select %24, %26, %5 : vector<1x8x8x128xi1>, vector<1x8x8x128xf32>
    %c0_10 = arith.constant 0 : index
    %c0_11 = arith.constant 0 : index
    %28 = vector.load %arg7[%c0_10, %c0_11] : memref<8x128xf32, #tpu.memory_space<vmem>>, vector<8x128xf32>
    %29 = vector.shape_cast %28 : vector<8x128xf32> to vector<1x8x1x128xf32>
    %c0_12 = arith.constant 0 : index
    %c0_13 = arith.constant 0 : index
    %30 = vector.load %arg8[%c0_12, %c0_13] : memref<8x128xf32, #tpu.memory_space<vmem>>, vector<8x128xf32>
    %31 = vector.shape_cast %30 : vector<8x128xf32> to vector<1x8x1x128xf32>
    %32 = vector.broadcast %29 : vector<1x8x1x128xf32> to vector<1x8x8x128xf32>
    %33 = arith.mulf %3, %32 : vector<1x8x8x128xf32>
    %34 = vector.broadcast %31 : vector<1x8x1x128xf32> to vector<1x8x8x128xf32>
    %35 = arith.mulf %27, %34 : vector<1x8x8x128xf32>
    %36 = arith.addf %33, %35 : vector<1x8x8x128xf32>
    %c0_14 = arith.constant 0 : index
    %c0_15 = arith.constant 0 : index
    %c0_16 = arith.constant 0 : index
    %c0_17 = arith.constant 0 : index
    %37 = vector.load %arg6[%c0_14, %c0_15, %c0_16, %c0_17] : memref<1x8x8x128xf32, #tpu.memory_space<vmem>>, vector<1x8x8x128xf32>
    tpu.vector_store %arg6[%c0_14, %c0_15, %c0_16, %c0_17], %36 {strides = array<i32>} : memref<1x8x8x128xf32, #tpu.memory_space<vmem>>, vector<1x8x8x128xf32>,
    return
  }
  func.func @transform_0(%arg0: i32, %arg1: i32, %arg2: memref<1xi32, #tpu.memory_space<smem>>) -> (i32, i32, i32, i32) {
    %c0_i32 = arith.constant 0 : i32
    %c0_i32_0 = arith.constant 0 : i32
    %c0_i32_1 = arith.constant 0 : i32
    return %arg1, %arg0, %c0_i32, %c0_i32_0 : i32, i32, i32, i32
  }
  func.func @transform_3(%arg0: i32, %arg1: i32, %arg2: memref<1xi32, #tpu.memory_space<smem>>) -> (i32, i32, i32, i32) {
    %c0_i32 = arith.constant 0 : i32
    %c0_i32_0 = arith.constant 0 : i32
    %c0_i32_1 = arith.constant 0 : i32
    return %arg1, %arg0, %c0_i32, %c0_i32_0 : i32, i32, i32, i32
  }
}

</mosaic_0001>

<bundles_post_ra>
// kernel: _rope_pallas.1
= control target key start
LH: loop header
LB: loop body
LE: loop exit
PB: predicated region body
PF: predicated region fallthrough
CT: control target
= control target key end

     0   :  { %s1233_s0 = inlined_call_operand.<no memory space> [shape: s32[1], index: 0, kind: input, shape index: {}]   ;;  %s1234_s1 = inlined_call_operand.hbm [shape: f32[2,8,8,128], index: 1, kind: input, shape index: {}]   ;;  %s1235_s2 = inlined_call_operand.hbm [shape: f32[16,128], index: 2, kind: input, shape index: {}]   ;;  %s1236_s3 = inlined_call_operand.hbm [shape: f32[16,128], index: 3, kind: input, shape index: {}]   ;;  %s1237_s4 = inlined_call_operand.hbm [shape: f32[2,8,8,128], index: 4, kind: output, shape index: {}]  }
   0x1   :  { %9 = sst [smem:[#allocation6]] %s1233_s0 }
   0x2   :  { %10 = vsyncpa [#allocation8], 0 }
   0x3   :  { %12 = vsyncpa [#allocation8 + $0x1], 0 }
   0x4   :  { %13 = vsyncpa [#allocation9], 0 }
   0x5   :  { %15 = vsyncpa [#allocation9 + $0x1], 0  ;;  %s917_s17 = smov 0   ;;  %s919_s18 = smov 0  }
   0x6   :  { %s921_s19 = smov 0   ;;  %s923_s20 = smov 0  }
   0x7   :  { %s925_s21 = smov 0   ;;  %s927_s22 = smov 0  }
   0x8 LB: > { %s607_s0 = sadd.s32 4294967295, %s876_s22   ;;  %s608_s23 = sadd.s32 4294967294, %s876_s22   ;;  %s876_s22 = sphi %s927_s22, %s21_s22   ;;  %s872_s21 = sphi %s925_s21, %s1253_s21   ;;  %s868_s20 = sphi %s923_s20, %s1252_s20   ;;  %s864_s19 = sphi %s921_s19, %s1251_s19   ;;  %s860_s18 = sphi %s919_s18, %s1250_s18   ;;  %s856_s17 = sphi %s917_s17, %s1249_s17  }
   0x9   : > { %s30_s24 = sadd.s32 1, %s872_s21  ;;  %s42_s25 = sadd.s32 1, %s864_s19 }
   0xa   : > { %p31_p0 = scmp.ge.s32.totalorder %s30_s24, 2  ;;  %p49_p1 = scmp.ne.s32.totalorder %s864_s19, %s860_s18 }
   0xb   : > { %p50_p2 = scmp.eq.s32.totalorder %s876_s22, 0  ;;  %p55_p3 = scmp.ne.s32.totalorder %s860_s18, %s856_s17 }
   0xc   : > { %s1255_s24 = smov (%p31_p0, %s30_s24), 0  ;;  %p56_p5 = scmp.eq.s32.totalorder %s607_s0, 0 }
   0xd   : > { %p958_p4 = por %p50_p2, %p49_p1  ;;  %s37_s27 = ssub.s32 %s872_s21, %s1255_s24 }
   0xe   : > { %p81_p6 = scmp.eq.s32.totalorder %s607_s0, 1  ;;  %p40_p7 = scmp.eq.s32.totalorder %s37_s27, 0 }
   0xf   : > { %p964_p8 = por %p56_p5, %p55_p3  ;;  %p87_p10 = scmp.eq.s32.totalorder %s608_s23, 1 }
  0x10   : > { %p968_p9 = por %p81_p6, %p49_p1  ;;  %p646_p13 = scmp.lt.s32.totalorder %s876_s22, 2 }
  0x11   : > { %s973_s30 = scalar_select %p40_p7, %s864_s19, %s42_s25  }
  0x12   : > { %p975_p11 = por %p87_p10, %p55_p3  ;;  %s107_s6 = sand.u32 1, %s864_s19  }
  0x13   : > { %s611_s7 = sshll.u32 %s107_s6, 6  ;;  %s627_s8 = sshll.u32 %s872_s21, 10 }
  0x14   : > { %s1242_s5 = scalar_select %p975_p11, 1, 0 }
  0x15   : > { %s119_s11 = scalar_lea.hbm %s1234_s1, %s627_s8  ;;  %s111_s12 = scalar_lea.vmem [#allocation7], %s611_s7 }
  0x16   : > { %s120_s13 = sshll.u32 %s111_s12, 4  ;;  %p988_p0 = pnand %p646_p13, %p958_p4  ;;  %s121_s13 = int_to_ptr.vmem [resolvable:$true] %s120_s13 }
  0x17   : > { %p614_p1 = scmp.ge.s32.totalorder %s876_s22, 1  ;;  %s108_s15 = scalar_lea.sflag [#allocation8], %s107_s6 }
  0x18   : > { %p710_p2 = pneg %p988_p0  ;;  %s721_s16 = scalar_lea.vmem %s121_s13, 1024 }
  0x19   : > { %p722_p3 = scmp.ne.s32.totalorder %s121_s13, %s721_s16  ;;  %s878_s0 = smov [#allocation7]  }
  0x1a   : > { %s726_s23 = sshll.u32 %s878_s0, 4  ;;  %s727_s23 = int_to_ptr.vmem [resolvable:$false] %s726_s23 }
  0x1b   : > { %p724_p5 = pnand %p722_p3, %p710_p2  ;;  %s728_s25 = scalar_lea.vmem %s727_s23, 2048 }
  0x1c   : > { %p729_p7 = scmp.lt.s32.totalorder %s121_s13, %s727_s23  ;;  %p730_p10 = scmp.lt.s32.totalorder %s728_s25, %s721_s16 }
  0x1d   : > { %p725_p6 = pneg %p724_p5 }
  0x1e   : > { %p731_p12 = por %p730_p10, %p729_p7 }
  0x20   : > { %p732_p4 = pnand %p731_p12, %p725_p6 }
  0x22   : > { %735 = shalt.err (!%p732_p4)
}
  0x23   : > { %s879_s26 = smov 128   ;;  %s880_s27 = smov 8  }
  0x24   : > { %641 = dma.hbm_to_vmem [thread:$0]  (!%p988_p0), %s119_s11, 1024, %s121_s13, %s108_s15, %s879_s26, %s879_s26, %s880_s27  }
  0x25   : > { %p128_p13 = scmp.lt.s32.totalorder %s876_s22, 3 }
  0x27   : > { %p129_p2 = pnand %p614_p1, %p128_p13 }
  0x28   : > { %s1001_s6 = sand.u32 (!%p129_p2), 1, %s860_s18  }
  0x29   : > { %132 = sbr.rel (%p129_p2) target bundleno = 265 (0x109), region = 24  ;;  %s1238_s7 = sshll.u32 (!%p129_p2), %s1001_s6, 6 }
  0x2a   : > { %s135_s8 = scalar_lea.sflag (!%p129_p2), [#allocation8], %s1001_s6  ;;  %s1007_s9 = scalar_lea.vmem (!%p129_p2), [#allocation7], %s1238_s7 }
  0x2e   : > { %839 = dma.done.wait (%p964_p8), %s135_s8, 1024  }
  0x2f   : > { %841 = vsyncadd (%p964_p8), %s135_s8, 4294966272  ;;  %s163_s10 = sld [smem:[#allocation6]]  ;;  %s881_s11 = smov [#allocation2]  }
  0x30   : > { %s175_s12 = sshll.u32 %s881_s11, 4  ;;  %s882_s13 = smov [#allocation3]   ;;  %s176_s12 = int_to_ptr.vmem [resolvable:$true] %s175_s12 }
  0x31   : > { %s189_s14 = sshll.u32 %s882_s13, 4  ;;  %p647_p12 = scmp.eq.s32.totalorder %s868_s20, 0  ;;  %s1014_s14 = int_to_ptr.vmem [resolvable:$true] %s189_s14 }
  0x35   : > { %s618_s15 = sshll.u32 %s163_s10, 4  ;;  %s740_s10 = scalar_lea.hbm %s1235_s2, 256 }
  0x36   : > { %s1019_s23 = scalar_lea.hbm %s1236_s3, %s618_s15  ;;  %s167_s26 = scalar_lea.hbm %s1235_s2, %s618_s15 }
  0x37   : > { %s736_s27 = scalar_lea.hbm %s167_s26, 128  ;;  %p741_p3 = scmp.lt.s32.totalorder %s167_s26, %s1235_s2 }
  0x38   : > { %p737_p8 = scmp.ne.s32.totalorder %s167_s26, %s736_s27  ;;  %p742_p5 = scmp.lt.s32.totalorder %s740_s10, %s736_s27 }
  0x3a   : > { %p738_p0 = pnand %p737_p8, %p647_p12  ;;  %p743_p6 = por %p742_p5, %p741_p3 }
  0x3c   : > { %p739_p1 = pneg %p738_p0 }
  0x3e   : > { %p744_p7 = pnand %p743_p6, %p739_p1 }
  0x40   : > { %747 = shalt.err (!%p744_p7)  }
  0x41   : > { %s748_s16 = scalar_lea.vmem %s176_s12, 128  ;;  %p755_p2 = scmp.lt.s32.totalorder %s176_s12, %s176_s12 }
  0x42   : > { %p749_p10 = scmp.ne.s32.totalorder %s176_s12, %s748_s16  ;;  %p756_p8 = scmp.lt.s32.totalorder %s748_s16, %s748_s16 }
  0x44   : > { %p750_p4 = pnand %p749_p10, %p647_p12  ;;  %p757_p0 = por %p756_p8, %p755_p2 }
  0x46   : > { %p751_p13 = pneg %p750_p4 }
  0x48   : > { %p758_p11 = pnand %p757_p0, %p751_p13 }
  0x4a   : > { %761 = shalt.err (!%p758_p11)  }
  0x4b   : > { %632 = dma.hbm_to_vmem [thread:$0]  (%p647_p12), %s167_s26, 128, %s176_s12, [#allocation4] }
  0x4c   : > { %s762_s7 = scalar_lea.hbm %s1019_s23, 128  ;;  %s766_s25 = scalar_lea.hbm %s1236_s3, 256 }
  0x4d   : > { %p763_p1 = scmp.ne.s32.totalorder %s1019_s23, %s762_s7  ;;  %p767_p11 = scmp.lt.s32.totalorder %s1019_s23, %s1236_s3 }
  0x4e   : > { %p768_p6 = scmp.lt.s32.totalorder %s766_s25, %s762_s7 }
  0x4f   : > { %p764_p3 = pnand %p763_p1, %p647_p12 }
  0x50   : > { %p769_p7 = por %p768_p6, %p767_p11 }
  0x51   : > { %p765_p5 = pneg %p764_p3 }
  0x53   : > { %p770_p10 = pnand %p769_p7, %p765_p5 }
  0x55   : > { %773 = shalt.err (!%p770_p10)  }
  0x56   : > { %s774_s12 = scalar_lea.vmem %s1014_s14, 128  ;;  %p781_p8 = scmp.lt.s32.totalorder %s1014_s14, %s1014_s14 }
  0x57   : > { %p775_p4 = scmp.ne.s32.totalorder %s1014_s14, %s774_s12  ;;  %p782_p0 = scmp.lt.s32.totalorder %s774_s12, %s774_s12 }
  0x59   : > { %p776_p13 = pnand %p775_p4, %p647_p12  ;;  %p783_p1 = por %p782_p0, %p781_p8 }
  0x5b   : > { %p777_p2 = pneg %p776_p13 }
  0x5d   : > { %p784_p3 = pnand %p783_p1, %p777_p2 }
  0x5f   : > { %787 = shalt.err (!%p784_p3)  }
  0x60   : > { %633 = dma.hbm_to_vmem [thread:$0]  (%p647_p12), %s1019_s23, 128, %s1014_s14, [#allocation4 + $0x1] }
  0x61   : > { %s1244_s26 = sshll.u32 %s1001_s6, 6 }
  0x62   : > { %s1059_s8 = scalar_lea.vmem [#allocation10], %s1244_s26 }
  0x63   : > { %843 = dma.done.wait (%p647_p12), [#allocation4], 128 }
  0x64   : > { %845 = vsyncadd (%p647_p12), [#allocation4], 4294967168 }
  0x65   : > { %847 = dma.done.wait (%p647_p12), [#allocation4 + $0x1], 128 }
  0x66   : > { %849 = vsyncadd (%p647_p12), [#allocation4 + $0x1], 4294967168  ;;  %v1070_v0 = vld [vmem:[%s1007_s9 + $0x10] sm:$0xff]  ;;  %v1073_v1 = vld [vmem:[%s1007_s9] sm:$0xff]  ;;  %s883_s14 = smov 127   ;;  %s884_s23 = smov 1   ;;  %v238_v8 = vlaneseq }
  0x67   : > { %210 = vrot.lane.b32.xlu1 %v1070_v0, %s883_s14  ;;  %206 = vrot.lane.b32.xlu0 %v1073_v1, %s883_s14  ;;  %v1078_v2 = vld [vmem:[%s1007_s9 + $0x18] sm:$0xff]  ;;  %v1081_v3 = vld [vmem:[%s1007_s9 + $0x8] sm:$0xff]  ;;  %v885_v9 = vmov 1966171168   ;;  %v269_v14 = vld [vmem:[#allocation2] sm:$0xff]  ;;  %s499_s11 = sshll.u32 %s1059_s8, 4  ;;  %s1183_s11 = int_to_ptr.vmem [resolvable:$true] %s499_s11 }
  0x68   : > { %v1086_v4 = vld [vmem:[%s1007_s9 + $0x28] sm:$0xff]  ;;  %v1089_v5 = vld [vmem:[%s1007_s9 + $0x20] sm:$0xff]  ;;  %v1094_v6 = vld [vmem:[%s1007_s9 + $0x38] sm:$0xff]  ;;  %v273_v10 = vunpack.c.l.s4 %v885_v9  ;;  %v276_v12 = vshrl.u32 %v238_v8, 7  ;;  %v271_v20 = vcombine.high %v269_v14, %v269_v14  ;;  %v239_v24 = vand.u32 127, %v238_v8  ;;  %s788_s7 = scalar_lea.vmem %s1183_s11, 1024 }
  0x69   : > { %v1097_v7 = vld [vmem:[%s1007_s9 + $0x30] sm:$0xff]  ;;  %v320_v15 = vld [vmem:[#allocation3] sm:$0xff]  ;;  %s628_s9 = sshll.u32 %s868_s20, 10  ;;  %s484_s20 = scalar_lea.sflag [#allocation9], %s1001_s6 }
  0x6a   : > { %v274_v11 = vunpack.c.0.s8 %v273_v10  ;;  %v322_v26 = vcombine.high %v320_v15, %v320_v15  ;;  %v1111_v28 = vsub.s32 0, %v276_v12  ;;  %v244_v33 = vand.u32 1, %v239_v24  ;;  %s1181_s16 = scalar_lea.hbm %s1237_s4, %s628_s9  ;;  %p789_p12 = scmp.ne.s32.totalorder %s1183_s11, %s788_s7 }
  0x6b   : > { %212 = vrot.lane.b32.xlu1 %v1078_v2, %s883_s14  ;;  %208 = vrot.lane.b32.xlu0 %v1081_v3, %s883_s14  ;;  %s886_s15 = smov [#allocation10]  }
  0x6c   : > { %v277_v13 = vsub.s32 %v274_v11, %v276_v12  ;;  %vm1123_vm0 = vcmp.eq.s32.totalorder %v244_v33, 0  ;;  %p790_p5 = pnand %p789_p12, %p968_p9  ;;  %s792_s0 = sshll.u32 %s886_s15, 4  ;;  %s793_s0 = int_to_ptr.vmem [resolvable:$false] %s792_s0 }
  0x6d   : > { %s794_s25 = scalar_lea.vmem %s793_s0, 2048  ;;  %p795_p6 = scmp.lt.s32.totalorder %s1183_s11, %s793_s0 }
  0x6e   : > { %v278_v16 = vrot.slane %v269_v14, %v277_v13  ;;  %v329_v19 = vrot.slane %v320_v15, %v277_v13  ;;  %v285_v29 = vrot.slane %v271_v20, %v277_v13  ;;  %v336_v37 = vrot.slane %v322_v26, %v277_v13  ;;  %p791_p11 = pneg %p790_p5  ;;  %p796_p7 = scmp.lt.s32.totalorder %s794_s25, %s788_s7 }
  0x6f   : > { %216 = vrot.lane.b32.xlu1 %v1086_v4, %s883_s14  ;;  %214 = vrot.lane.b32.xlu0 %v1089_v5, %s883_s14 }
  0x70   : > { %v286_v21 = vcombine.high %v278_v16, %v278_v16  ;;  %v337_v25 = vcombine.high %v329_v19, %v329_v19  ;;  %v294_v27 = vrot.slane %v278_v16, %v277_v13  ;;  %v345_v34 = vrot.slane %v329_v19, %v277_v13  ;;  %p797_p10 = por %p796_p7, %p795_p6 }
  0x71   : > { %v287_v39 = vcombine.high %v285_v29, %v285_v29  ;;  %v301_v42 = vrot.slane %v285_v29, %v277_v13  ;;  %v338_v51 = vcombine.high %v336_v37, %v336_v37  ;;  %v352_v8 = vrot.slane %v336_v37, %v277_v13 }
  0x72   : > { %v308_v30 = vrot.slane %v286_v21, %v277_v13  ;;  %v316_v35 = vcombine.high %v294_v27, %v294_v27  ;;  %v359_v36 = vrot.slane %v337_v25, %v277_v13  ;;  %v374_v38 = vrot.slane %v294_v27, %v1111_v28  ;;  %p798_p4 = pnand %p797_p10, %p791_p11 }
  0x73   : > { %220 = vrot.lane.b32.xlu1 %v1094_v6, %s883_s14  ;;  %218 = vrot.lane.b32.xlu0 %v1097_v7, %s883_s14  ;;  %v422_v46 = vrot.slane %v345_v34, %v1111_v28  ;;  %v367_v50 = vcombine.high %v345_v34, %v345_v34  ;;  %v315_v53 = vrot.slane %v287_v39, %v277_v13 }
  0x74   : > { %v318_v40 = vcombine.high %v308_v30, %v308_v30  ;;  %v378_v41 = vrot.slane %v308_v30, %v1111_v28  ;;  %v369_v47 = vcombine.high %v359_v36, %v359_v36  ;;  %v382_v48 = vrot.slane %v316_v35, %v1111_v28 }
  0x75   : > { %v426_v49 = vrot.slane %v359_v36, %v1111_v28  ;;  %v411_v52 = vmul.f32 %v374_v38, %v1073_v1  ;;  %v390_v58 = vrot.slane %v301_v42, %v1111_v28  ;;  %v317_v59 = vcombine.high %v301_v42, %v301_v42 }
  0x76   : > { %v386_v56 = vrot.slane %v318_v40, %v1111_v28  ;;  %v412_v57 = vmul.f32 %v378_v41, %v1081_v3  ;;  %v430_v11 = vrot.slane %v367_v50, %v1111_v28  ;;  %v413_v12 = vmul.f32 %v382_v48, %v1070_v0 }
  0x77   : > { %224 = vrot.lane.b32.xlu1 %v1081_v3, %s884_s23  ;;  %222 = vrot.lane.b32.xlu0 %v1073_v1, %s884_s23  ;;  %v434_v1 = vrot.slane %v369_v47, %v1111_v28  ;;  %v366_v3 = vrot.slane %v338_v51, %v277_v13  ;;  %v394_v14 = vrot.slane %v315_v53, %v1111_v28 }
  0x78   : > { %v319_v19 = vcombine.high %v315_v53, %v315_v53  ;;  %v368_v26 = vcombine.high %v352_v8, %v352_v8  ;;  %v415_v29 = vmul.f32 %v390_v58, %v1089_v5  ;;  %v398_v30 = vrot.slane %v317_v59, %v1111_v28 }
  0x79   : > { %v370_v27 = vcombine.high %v366_v3, %v366_v3  ;;  %v416_v35 = vmul.f32 %v394_v14, %v1086_v4 }
  0x7a   : > { %v402_v36 = vrot.slane %v319_v19, %v1111_v28  ;;  %v446_v42 = vrot.slane %v368_v26, %v1111_v28 }
  0x7b   : > { %228 = vrot.lane.b32.xlu1 %v1078_v2, %s884_s23  ;;  %226 = vrot.lane.b32.xlu0 %v1070_v0, %s884_s23  ;;  %v438_v0 = vrot.slane %v352_v8, %v1111_v28 }
  0x7c   : > { %v418_v48 = vmul.f32 %v402_v36, %v1094_v6 }
  0x7f   : > { %232 = vrot.lane.b32.xlu1 %v1086_v4, %s884_s23  ;;  %230 = vrot.lane.b32.xlu0 %v1089_v5, %s884_s23  ;;  %v450_v4 = vrot.slane %v370_v27, %v1111_v28 }
  0x83   : > { %236 = vrot.lane.b32.xlu1 %v1094_v6, %s884_s23  ;;  %234 = vrot.lane.b32.xlu0 %v1097_v7, %s884_s23 }
  0xd9   : > { %v1109_v17 = vpop.permute.xlu1 %210  ;;  %v207_v18 = vpop.permute.xlu0 %206 }
  0xda   : > { %v253_v54 = vsub.f32 0.0, %v207_v18  ;;  %v255_v15 = vsub.f32 0.0, %v1109_v17  ;;  %v414_v18 = vmul.f32 %v386_v56, %v1078_v2  ;;  %v442_v2 = vrot.slane %v366_v3, %v1111_v28 }
  0xdd   : > { %v213_v22 = vpop.permute.xlu1 %212  ;;  %v209_v23 = vpop.permute.xlu0 %208 }
  0xde   : > { %v254_v55 = vsub.f32 0.0, %v209_v23  ;;  %v256_v16 = vsub.f32 0.0, %v213_v22 }
  0xe1   : > { %v1113_v31 = vpop.permute.xlu1 %216  ;;  %v1115_v32 = vpop.permute.xlu0 %214 }
  0xe2   : > { %v258_v33 = vsub.f32 0.0, %v1113_v31  ;;  %v257_v34 = vsub.f32 0.0, %v1115_v32 }
  0xe5   : > { %v1119_v43 = vpop.permute.xlu1 %220  ;;  %v1121_v44 = vpop.permute.xlu0 %218 }
  0xe6   : > { %v259_v47 = vsub.f32 0.0, %v1121_v44 }
  0xe9   : > { %v225_v60 = vpop.permute.xlu1 %224  ;;  %v223_v61 = vpop.permute.xlu0 %222 }
  0xea   : > { %v262_v62 = vsel %vm1123_vm0, %v254_v55, %v225_v60  ;;  %v261_v63 = vsel %vm1123_vm0, %v253_v54, %v223_v61 }
  0xeb   : > { %v460_v9 = vmul.f32 %v426_v49, %v262_v62  ;;  %v459_v10 = vmul.f32 %v422_v46, %v261_v63  ;;  %v260_v46 = vsub.f32 0.0, %v1119_v43  ;;  %v417_v49 = vmul.f32 %v398_v30, %v1097_v7 }
  0xed   : > { %v468_v20 = vadd.f32 %v460_v9, %v412_v57  ;;  %v467_v21 = vadd.f32 %v459_v10, %v411_v52  ;;  %v229_v23 = vpop.permute.xlu1 %228  ;;  %v227_v24 = vpop.permute.xlu0 %226 }
  0xee   : > { %v264_v25 = vsel %vm1123_vm0, %v256_v16, %v229_v23  ;;  %v263_v13 = vsel %vm1123_vm0, %v255_v15, %v227_v24 }
  0xef   : > { %476 = vst [vmem:[%s1059_s8 + $0x8] sm:$0xff] %v468_v20  ;;  %475 = vst [vmem:[%s1059_s8] sm:$0xff] %v467_v21  ;;  %v462_v17 = vmul.f32 %v434_v1, %v264_v25  ;;  %v461_v22 = vmul.f32 %v430_v11, %v263_v13 }
  0xf1   : > { %v470_v37 = vadd.f32 %v462_v17, %v414_v18  ;;  %v469_v38 = vadd.f32 %v461_v22, %v413_v12  ;;  %v233_v39 = vpop.permute.xlu1 %232  ;;  %v231_v40 = vpop.permute.xlu0 %230 }
  0xf2   : > { %v266_v41 = vsel %vm1123_vm0, %v258_v33, %v233_v39  ;;  %v265_v5 = vsel %vm1123_vm0, %v257_v34, %v231_v40 }
  0xf3   : > { %478 = vst [vmem:[%s1059_s8 + $0x18] sm:$0xff] %v470_v37  ;;  %477 = vst [vmem:[%s1059_s8 + $0x10] sm:$0xff] %v469_v38  ;;  %v464_v31 = vmul.f32 %v442_v2, %v266_v41  ;;  %v463_v32 = vmul.f32 %v438_v0, %v265_v5 }
  0xf5   : > { %v472_v50 = vadd.f32 %v464_v31, %v416_v35  ;;  %v471_v51 = vadd.f32 %v463_v32, %v415_v29  ;;  %v237_v52 = vpop.permute.xlu1 %236  ;;  %v235_v53 = vpop.permute.xlu0 %234 }
  0xf6   : > { %v268_v28 = vsel %vm1123_vm0, %v260_v46, %v237_v52  ;;  %v267_v43 = vsel %vm1123_vm0, %v259_v47, %v235_v53 }
  0xf7   : > { %480 = vst [vmem:[%s1059_s8 + $0x28] sm:$0xff] %v472_v50  ;;  %479 = vst [vmem:[%s1059_s8 + $0x20] sm:$0xff] %v471_v51  ;;  %v466_v6 = vmul.f32 %v450_v4, %v268_v28  ;;  %v465_v7 = vmul.f32 %v446_v42, %v267_v43 }
  0xf9   : > { %v474_v44 = vadd.f32 %v466_v6, %v418_v48  ;;  %v473_v54 = vadd.f32 %v465_v7, %v417_v49 }
  0xfb   : > { %482 = vst [vmem:[%s1059_s8 + $0x38] sm:$0xff] %v474_v44  ;;  %481 = vst [vmem:[%s1059_s8 + $0x30] sm:$0xff] %v473_v54 }
  0xfc   : > { %801 = shalt.err (!%p798_p4)
}
  0xfd   : > { %s802_s28 = scalar_lea.hbm %s1181_s16, 1024  ;;  %s806_s26 = scalar_lea.hbm %s1237_s4, 2048 }
  0xfe   : > { %p803_p13 = scmp.ne.s32.totalorder %s1181_s16, %s802_s28  ;;  %p807_p0 = scmp.lt.s32.totalorder %s1181_s16, %s1237_s4 }
  0xff   : > { %p808_p1 = scmp.lt.s32.totalorder %s806_s26, %s802_s28 }
 0x100   : > { %p804_p2 = pnand %p803_p13, %p968_p9 }
 0x101   : > { %p809_p3 = por %p808_p1, %p807_p0 }
 0x102   : > { %p805_p8 = pneg %p804_p2 }
 0x104   : > { %p810_p12 = pnand %p809_p3, %p805_p8 }
 0x106   : > { %813 = shalt.err (!%p810_p12)
}
 0x107   : > { %s887_s23 = smov 128   ;;  %s888_s9 = smov 8  }
 0x108   : > { %636 = dma.vmem_to_hbm [thread:$0]  (%p968_p9), %s1183_s11, 1024, %s1181_s16, %s484_s20, %s887_s23, %s887_s23, %s888_s9  }
 0x109 PF: > { %s514_s10 = sand.u32 1, %s856_s17   ;;  %p1247_p5 = scmp.ne.s32.totalorder %s1242_s5, 0 }
 0x10a   : > { %p1248_p11 = scmp.ge.s32.totalorder %s876_s22, 2  ;;  %s515_s13 = scalar_lea.sflag [#allocation9], %s514_s10 }
 0x10c   : > { %p643_p6 = pnand %p1248_p11, %p1247_p5 }
 0x10e   : > { %p644_p7 = pneg %p643_p6 }
 0x110   : > { %851 = dma.done.wait (%p644_p7), %s515_s13, 1024  }
 0x111   : > { %853 = vsyncadd (%p644_p7), %s515_s13, 4294966272  ;;  %s21_s22 = sadd.s32 1, %s876_s22   ;;  %s1249_s17 = smov %s860_s18 }
 0x112   : > { %p18_p10 = scmp.ge.s32.totalorder %s21_s22, 4   ;;  %s1250_s18 = smov %s864_s19 }
 0x113   : > { %s1251_s19 = smov %s973_s30  ;;  %s1252_s20 = smov %s872_s21 }
 0x114   : > { %s1253_s21 = smov %s1255_s24  ;;  %20 = sbr.rel (!%p18_p10) target bundleno = 8 (0x8), region = 85 }
 0x119   :  { %520 = vsyncpa [#allocation8], 1 }
 0x11a   :  { %522 = vsyncpa [#allocation8 + $0x1], 1 }
 0x11b   :  { %523 = vsyncpa [#allocation9], 1 }
 0x11c   :  { %525 = vsyncpa [#allocation9 + $0x1], 1 }
 0x11d   :  { %526 = vsyncmov [#allocation4] }
 0x120   :  { %s527_s29 = vpop.sfrf %526 }
 0x121   :  { %p625_p9 = scmp.ne.s32.totalorder %s527_s29, 0 }
 0x123   :  { %531 = shalt.err (%p625_p9)  }
 0x124   :  { %533 = vsyncmov [#allocation4 + $0x1] }
 0x127   :  { %s534_s5 = vpop.sfrf %533 }
 0x128   :  { %p626_p4 = scmp.ne.s32.totalorder %s534_s5, 0 }
 0x12a   :  { %538 = shalt.err (%p626_p4)  }

</bundles_post_ra>
